<compile_context>
chip_gen: v7x
topology: tpu7x:2x2x1
jax: 0.10.0
libtpu: 0.0.40
codegen_flags: <defaults>
</compile_context>

<pallas_src>
import functools
import math

import jax
import jax.numpy as jnp
from jax import lax
from jax.experimental import pallas as pl
from jax.experimental.pallas import tpu as pltpu


def _round_up(x, m):
    return (x + m - 1) // m * m


def _cdiv(a, b):
    return -(-a // b)


def _tpu_vmem_capacity_bytes():
    """Physical VMEM per core, with conservative fallbacks."""
    try:
        return int(pltpu.get_tpu_info().vmem_capacity_bytes)
    except Exception:
        pass
    try:
        kind = jax.devices()[0].device_kind.lower()
    except Exception:
        kind = ""
    if "v5" in kind or "v6" in kind:
        return 128 << 20
    return 64 << 20  # v7x / unknown: be conservative


def _default_row_tile_cap():
    """128 on v5* (128-wide MXU), 256 on v6e/v7x (256x256 MXU)."""
    try:
        kind = jax.devices()[0].device_kind.lower()
    except Exception:
        kind = ""
    return 128 if "v5" in kind else 256


def _sdpa_kernel(q_ref, k_ref, v_ref, o_ref, *, n_valid, row_tile, inv_scale,
                 mm_dtype):
    # q_ref: (row_tile, Kp)  query tile for one (batch, row-tile) grid step
    # k_ref: (Np, Kp)        keys, VMEM-resident across the whole grid
    # v_ref: (Vr, Np)        bias/value matrix (input3), VMEM-resident
    # o_ref: (row_tile, Np)  output tile (lane-dense: Np multiple of 128)
    i = pl.program_id(1)
    np_cols = o_ref.shape[-1]

    # Fold the 1/sqrt(N) scale into q (Kp-wide) instead of scaling s (Np-wide).
    # A Python-float scale is weakly typed, so q keeps its dtype (bf16 or f32).
    q = q_ref[...] * inv_scale
    k = k_ref[...]
    if mm_dtype is not None:  # static: optional reduced-precision matmuls
        q = q.astype(mm_dtype)
        k = k.astype(mm_dtype)

    # scores = (q / sqrt(N)) @ k^T, f32 accumulation on the MXU.
    s = lax.dot_general(q, k, (((1,), (1,)), ((), ())),
                        preferred_element_type=jnp.float32)

    # Additive bias: rows of input3 matching this row tile, sliced from the
    # resident value slab (no separate broadcast bias array anywhere).
    row0 = pl.multiple_of(i * row_tile, 8)
    s = s + v_ref[pl.ds(row0, row_tile), :].astype(jnp.float32)

    # Mask padded key columns (zero-padded keys + zero bias would otherwise
    # leak into the softmax denominator).
    if n_valid < np_cols:  # static
        col = lax.broadcasted_iota(jnp.int32, s.shape, dimension=1)
        s = jnp.where(col < n_valid, s, jnp.float32(-1e30))

    # Numerically stable softmax with deferred normalization.
    m = jnp.max(s, axis=-1, keepdims=True)
    p = jnp.exp(s - m)
    denom = jnp.sum(p, axis=-1, keepdims=True)

    # (p @ V) in the value dtype (bf16 stays bf16), f32 accumulate, then
    # normalize with the EUP reciprocal (frees VPU slots; ~1e-4 rel err, well
    # inside the test tolerance).
    pv_dtype = v_ref.dtype if mm_dtype is None else mm_dtype
    v = v_ref[pl.ds(0, np_cols), :].astype(pv_dtype)
    acc = jnp.dot(p.astype(pv_dtype), v, preferred_element_type=jnp.float32)
    out = acc * pl.reciprocal(denom, approx=True)
    o_ref[...] = out.astype(o_ref.dtype)


def model_forward(input1, input2, input3, *, row_tile_cap=None,
                  matmul_dtype=None):
    B, M, K = input1.shape
    N, K2 = input2.shape
    assert K == K2, "contraction dims must match"
    assert input3.shape == (N, N) and M == N, \
        "bias/value matrix must be (N, N) with M == N"

    dtype = input1.dtype
    if row_tile_cap is None:
        row_tile_cap = _default_row_tile_cap()

    # TPU-friendly padded sizes: lanes (last dim) multiples of 128, sublanes
    # (second-to-last) multiples of 8.
    Kp = _round_up(K, 128)
    Np = _round_up(N, 128)
    rows_m = _round_up(M, 8)
    row_tile = min(row_tile_cap, rows_m)
    # Guarantee >= 2 grid steps when there is enough work, so both v7x
    # TensorCores (and the software pipeline) get fed.
    if B * _cdiv(rows_m, row_tile) < 2 and rows_m >= 16:
        row_tile = _round_up(_cdiv(rows_m, 2), 8)
    Mp = _round_up(M, row_tile)
    m_tiles = Mp // row_tile
    Vr = max(Mp, Np)  # rows of the bias/value slab (bias slices need Mp rows)

    # Pad only when needed (each wrapper-side pad is a full HBM copy in XLA).
    q = input1
    if (Mp, Kp) != (M, K):
        q = jnp.pad(q, ((0, 0), (0, Mp - M), (0, Kp - K)))
    keys = input2
    if (Np, Kp) != (N, K):
        keys = jnp.pad(keys, ((0, Np - N), (0, Kp - K)))
    value = input3
    if (Vr, Np) != (N, N):
        value = jnp.pad(value, ((0, Vr - N), (0, Np - N)))

    kernel = functools.partial(
        _sdpa_kernel,
        n_valid=N,
        row_tile=row_tile,
        inv_scale=1.0 / math.sqrt(N),  # module scales by sqrt of score last dim
        mm_dtype=matmul_dtype,
    )

    itemsize = jnp.dtype(dtype).itemsize
    vmem_cap = int(_tpu_vmem_capacity_bytes() * 0.85)  # headroom for internals

    def build_and_run(single_buffer_residents):
        # Resident (constant index_map) blocks: single-buffer when supported.
        resident_kwargs = {}
        if single_buffer_residents and hasattr(pl, "Buffered"):
            resident_kwargs = dict(pipeline_mode=pl.Buffered(1))
        try:
            k_spec = pl.BlockSpec((Np, Kp), lambda b, i: (0, 0),
                                  **resident_kwargs)
            v_spec = pl.BlockSpec((Vr, Np), lambda b, i: (0, 0),
                                  **resident_kwargs)
        except TypeError:
            resident_kwargs = {}
            k_spec = pl.BlockSpec((Np, Kp), lambda b, i: (0, 0))
            v_spec = pl.BlockSpec((Vr, Np), lambda b, i: (0, 0))
        resident_bufs = 1 if resident_kwargs else 2

        # Explicit scoped-VMEM budget: streamed tiles double-buffered,
        # residents x buffer count, plus the f32 s/p/acc live set and slack
        # for compiler-internal scratch; capped below physical VMEM.
        vmem_bytes = (
            2 * row_tile * Kp * itemsize                    # q tiles
            + 2 * row_tile * Np * itemsize                  # out tiles
            + resident_bufs * (Np * Kp + Vr * Np) * itemsize  # keys + value
            + 3 * row_tile * Np * 4                         # f32 intermediates
            + (4 << 20))                                    # internal scratch
        vmem_limit = int(min(max(vmem_bytes, 32 << 20), vmem_cap))

        return pl.pallas_call(
            kernel,
            out_shape=jax.ShapeDtypeStruct((B, Mp, Np), dtype),
            grid_spec=pltpu.PrefetchScalarGridSpec(
                num_scalar_prefetch=0,
                grid=(B, m_tiles),
                in_specs=[
                    pl.BlockSpec((None, row_tile, Kp),
                                 lambda b, i: (b, i, 0)),   # q tiles (streamed)
                    k_spec,                                  # keys (resident)
                    v_spec,                                  # bias/value (resident)
                ],
                out_specs=pl.BlockSpec((None, row_tile, Np),
                                       lambda b, i: (b, i, 0)),
            ),
            compiler_params=pltpu.CompilerParams(
                dimension_semantics=("parallel", "parallel"),
                vmem_limit_bytes=vmem_limit,
            ),
        )(q, keys, value)

    try:
        out_padded = build_and_run(True)
    except Exception:
        # Fallback for jax versions where single-buffering via pipeline_mode
        # is rejected at lowering time: default double-buffered residents.
        out_padded = build_and_run(False)

    return out_padded[:, :M, :N]


def model_forward_ref(input1, input2, input3):
    v1 = jnp.einsum("bmk,nk->bmn", input1, input2)
    v2 = v1 / math.sqrt(v1.shape[-1])
    v3 = v2 + input3
    v4 = jax.nn.softmax(v3, axis=-1)
    return jnp.einsum("bmn,np->bmp", v4, input3)


if __name__ == "__main__":
    key = jax.random.PRNGKey(0)
    k1, k2, k3 = jax.random.split(key, 3)

    B, M, K = 2, 8, 32
    N = M  # bias matrix doubles as the value matrix, so M == N

    input1 = jax.random.normal(k1, (B, M, K), dtype=jnp.float32)
    input2 = jax.random.normal(k2, (N, K), dtype=jnp.float32)
    input3 = jax.random.normal(k3, (N, N), dtype=jnp.float32)

    out = jax.block_until_ready(model_forward(input1, input2, input3))
    ref = jax.block_until_ready(model_forward_ref(input1, input2, input3))

    assert out.shape == (B, M, N)
    max_err = float(jnp.max(jnp.abs(out - ref)))
    assert jnp.allclose(out, ref, atol=5e-3, rtol=5e-3), \
        f"mismatch vs reference (max abs err {max_err})"

    print("KERNEL_OK")
</pallas_src>

<mosaic_0001>
module attributes {stable_mosaic.version = 11 : i64} {
  func.func @_sdpa_kernel(%arg0: i32, %arg1: i32, %arg2: memref<1x8x128xf32, #tpu.memory_space<vmem>>, %arg3: memref<128x128xf32, #tpu.memory_space<vmem>>, %arg4: memref<128x128xf32, #tpu.memory_space<vmem>>, %arg5: memref<1x8x128xf32, #tpu.memory_space<vmem>>) attributes {dimension_semantics = [#tpu.dimension_semantics<parallel>, #tpu.dimension_semantics<parallel>], iteration_bounds = array<i64: 2, 1>, scalar_prefetch = 0 : i64, scratch_operands = 0 : i64, tpu.core_type = #tpu.core_type<tc>, window_params = [{transform_indices = @transform_0, window_bounds = array<i64: 1, 8, 128>}, {pipeline_mode = #tpu.pipeline_mode<synchronous>, transform_indices = @transform_1, window_bounds = array<i64: 128, 128>}, {pipeline_mode = #tpu.pipeline_mode<synchronous>, transform_indices = @transform_2, window_bounds = array<i64: 128, 128>}, {transform_indices = @transform_3, window_bounds = array<i64: 1, 8, 128>}]} {
    %c0 = arith.constant 0 : index
    %c0_0 = arith.constant 0 : index
    %c0_1 = arith.constant 0 : index
    %0 = vector.load %arg2[%c0, %c0_0, %c0_1] : memref<1x8x128xf32, #tpu.memory_space<vmem>>, vector<1x8x128xf32>
    %1 = vector.shape_cast %0 : vector<1x8x128xf32> to vector<8x128xf32>
    %cst = arith.constant 0.353553385 : f32
    %2 = vector.broadcast %cst : f32 to vector<8x128xf32>
    %3 = arith.mulf %1, %2 : vector<8x128xf32>
    %c0_2 = arith.constant 0 : index
    %c0_3 = arith.constant 0 : index
    %4 = vector.load %arg3[%c0_2, %c0_3] : memref<128x128xf32, #tpu.memory_space<vmem>>, vector<128x128xf32>
    %cst_4 = arith.constant dense<0.000000e+00> : vector<8x128xf32>
    %5 = tpu.matmul %3, %4, %cst_4 {dimension_numbers = #tpu.dot_dimension_numbers<[1], [1], [0], [0], [0, 0, 1, 0], [], []>} : vector<8x128xf32>, vector<128x128xf32>, vector<8x128xf32> -> vector<8x128xf32>
    %c8_i32 = arith.constant 8 : i32
    %6 = arith.muli %arg1, %c8_i32 : i32
    %7 = tpu.assume_multiple %6, 8 : i32
    %8 = arith.index_cast %7 : i32 to index
    %c0_5 = arith.constant 0 : index
    %9 = vector.load %arg4[%8, %c0_5] : memref<128x128xf32, #tpu.memory_space<vmem>>, vector<8x128xf32>
    %10 = arith.addf %5, %9 : vector<8x128xf32>
    %11 = tpu.iota {dimensions = array<i32: 1>} : vector<8x128xi32>
    %c8_i32_6 = arith.constant 8 : i32
    %12 = vector.broadcast %c8_i32_6 : i32 to vector<8x128xi32>
    %13 = arith.cmpi slt, %11, %12 : vector<8x128xi32>
    %cst_7 = arith.constant -1.000000e+30 : f32
    %14 = vector.broadcast %cst_7 : f32 to vector<8x128xf32>
    %15 = arith.select %13, %10, %14 : vector<8x128xi1>, vector<8x128xf32>
    %cst_8 = arith.constant dense<0xFF800000> : vector<8xf32>
    %16 = vector.multi_reduction <maximumf>, %15, %cst_8 [1] : vector<8x128xf32> to vector<8xf32>
    %17 = vector.shape_cast %16 : vector<8xf32> to vector<8x1xf32>
    %18 = vector.broadcast %17 : vector<8x1xf32> to vector<8x128xf32>
    %19 = arith.subf %15, %18 : vector<8x128xf32>
    %20 = math.exp %19 : vector<8x128xf32>
    %cst_9 = arith.constant dense<0.000000e+00> : vector<8xf32>
    %21 = vector.multi_reduction <add>, %20, %cst_9 [1] : vector<8x128xf32> to vector<8xf32>
    %22 = vector.shape_cast %21 : vector<8xf32> to vector<8x1xf32>
    %c0_10 = arith.constant 0 : index
    %c0_11 = arith.constant 0 : index
    %23 = vector.load %arg4[%c0_10, %c0_11] : memref<128x128xf32, #tpu.memory_space<vmem>>, vector<128x128xf32>
    %cst_12 = arith.constant dense<0.000000e+00> : vector<8x128xf32>
    %24 = tpu.matmul %20, %23, %cst_12 {dimension_numbers = #tpu.dot_dimension_numbers<[1], [0], [0], [1], [0, 0, 1, 1], [], []>} : vector<8x128xf32>, vector<128x128xf32>, vector<8x128xf32> -> vector<8x128xf32>
    %25 = tpu.reciprocal %22 {approx = true} : vector<8x1xf32> -> vector<8x1xf32>
    %26 = vector.broadcast %25 : vector<8x1xf32> to vector<8x128xf32>
    %27 = arith.mulf %24, %26 : vector<8x128xf32>
    %c0_13 = arith.constant 0 : index
    %c0_14 = arith.constant 0 : index
    %c0_15 = arith.constant 0 : index
    %28 = vector.load %arg5[%c0_13, %c0_14, %c0_15] : memref<1x8x128xf32, #tpu.memory_space<vmem>>, vector<1x8x128xf32>
    %29 = vector.shape_cast %28 : vector<1x8x128xf32> to vector<8x128xf32>
    %30 = vector.shape_cast %27 : vector<8x128xf32> to vector<1x8x128xf32>
    tpu.vector_store %arg5[%c0_13, %c0_14, %c0_15], %30 {strides = array<i32>} : memref<1x8x128xf32, #tpu.memory_space<vmem>>, vector<1x8x128xf32>,
    return
  }
  func.func @transform_0(%arg0: i32, %arg1: i32) -> (i32, i32, i32) {
    %c0_i32 = arith.constant 0 : i32
    %c0_i32_0 = arith.constant 0 : i32
    return %arg0, %arg1, %c0_i32 : i32, i32, i32
  }
  func.func @transform_1(%arg0: i32, %arg1: i32) -> (i32, i32) {
    %c0_i32 = arith.constant 0 : i32
    %c0_i32_0 = arith.constant 0 : i32
    %c0_i32_1 = arith.constant 0 : i32
    return %c0_i32, %c0_i32_0 : i32, i32
  }
  func.func @transform_2(%arg0: i32, %arg1: i32) -> (i32, i32) {
    %c0_i32 = arith.constant 0 : i32
    %c0_i32_0 = arith.constant 0 : i32
    %c0_i32_1 = arith.constant 0 : i32
    return %c0_i32, %c0_i32_0 : i32, i32
  }
  func.func @transform_3(%arg0: i32, %arg1: i32) -> (i32, i32, i32) {
    %c0_i32 = arith.constant 0 : i32
    %c0_i32_0 = arith.constant 0 : i32
    return %arg0, %arg1, %c0_i32 : i32, i32, i32
  }
}

module attributes {stable_mosaic.version = 11 : i64} {
  func.func @_sdpa_kernel(%arg0: i32, %arg1: i32, %arg2: memref<1x8x128xf32, #tpu.memory_space<vmem>>, %arg3: memref<128x128xf32, #tpu.memory_space<vmem>>, %arg4: memref<128x128xf32, #tpu.memory_space<vmem>>, %arg5: memref<1x8x128xf32, #tpu.memory_space<vmem>>) attributes {dimension_semantics = [#tpu.dimension_semantics<parallel>, #tpu.dimension_semantics<parallel>], iteration_bounds = array<i64: 2, 1>, scalar_prefetch = 0 : i64, scratch_operands = 0 : i64, tpu.core_type = #tpu.core_type<tc>, window_params = [{transform_indices = @transform_0, window_bounds = array<i64: 1, 8, 128>}, {pipeline_mode = #tpu.pipeline_mode<synchronous>, transform_indices = @transform_1, window_bounds = array<i64: 128, 128>}, {pipeline_mode = #tpu.pipeline_mode<synchronous>, transform_indices = @transform_2, window_bounds = array<i64: 128, 128>}, {transform_indices = @transform_3, window_bounds = array<i64: 1, 8, 128>}]} {
    %c0 = arith.constant 0 : index
    %c0_0 = arith.constant 0 : index
    %c0_1 = arith.constant 0 : index
    %0 = vector.load %arg2[%c0, %c0_0, %c0_1] : memref<1x8x128xf32, #tpu.memory_space<vmem>>, vector<1x8x128xf32>
    %1 = vector.shape_cast %0 : vector<1x8x128xf32> to vector<8x128xf32>
    %cst = arith.constant 0.353553385 : f32
    %2 = vector.broadcast %cst : f32 to vector<8x128xf32>
    %3 = arith.mulf %1, %2 : vector<8x128xf32>
    %c0_2 = arith.constant 0 : index
    %c0_3 = arith.constant 0 : index
    %4 = vector.load %arg3[%c0_2, %c0_3] : memref<128x128xf32, #tpu.memory_space<vmem>>, vector<128x128xf32>
    %cst_4 = arith.constant dense<0.000000e+00> : vector<8x128xf32>
    %5 = tpu.matmul %3, %4, %cst_4 {dimension_numbers = #tpu.dot_dimension_numbers<[1], [1], [0], [0], [0, 0, 1, 0], [], []>} : vector<8x128xf32>, vector<128x128xf32>, vector<8x128xf32> -> vector<8x128xf32>
    %c8_i32 = arith.constant 8 : i32
    %6 = arith.muli %arg1, %c8_i32 : i32
    %7 = tpu.assume_multiple %6, 8 : i32
    %8 = arith.index_cast %7 : i32 to index
    %c0_5 = arith.constant 0 : index
    %9 = vector.load %arg4[%8, %c0_5] : memref<128x128xf32, #tpu.memory_space<vmem>>, vector<8x128xf32>
    %10 = arith.addf %5, %9 : vector<8x128xf32>
    %11 = tpu.iota {dimensions = array<i32: 1>} : vector<8x128xi32>
    %c8_i32_6 = arith.constant 8 : i32
    %12 = vector.broadcast %c8_i32_6 : i32 to vector<8x128xi32>
    %13 = arith.cmpi slt, %11, %12 : vector<8x128xi32>
    %cst_7 = arith.constant -1.000000e+30 : f32
    %14 = vector.broadcast %cst_7 : f32 to vector<8x128xf32>
    %15 = arith.select %13, %10, %14 : vector<8x128xi1>, vector<8x128xf32>
    %cst_8 = arith.constant dense<0xFF800000> : vector<8xf32>
    %16 = vector.multi_reduction <maximumf>, %15, %cst_8 [1] : vector<8x128xf32> to vector<8xf32>
    %17 = vector.shape_cast %16 : vector<8xf32> to vector<8x1xf32>
    %18 = vector.broadcast %17 : vector<8x1xf32> to vector<8x128xf32>
    %19 = arith.subf %15, %18 : vector<8x128xf32>
    %20 = math.exp %19 : vector<8x128xf32>
    %cst_9 = arith.constant dense<0.000000e+00> : vector<8xf32>
    %21 = vector.multi_reduction <add>, %20, %cst_9 [1] : vector<8x128xf32> to vector<8xf32>
    %22 = vector.shape_cast %21 : vector<8xf32> to vector<8x1xf32>
    %c0_10 = arith.constant 0 : index
    %c0_11 = arith.constant 0 : index
    %23 = vector.load %arg4[%c0_10, %c0_11] : memref<128x128xf32, #tpu.memory_space<vmem>>, vector<128x128xf32>
    %cst_12 = arith.constant dense<0.000000e+00> : vector<8x128xf32>
    %24 = tpu.matmul %20, %23, %cst_12 {dimension_numbers = #tpu.dot_dimension_numbers<[1], [0], [0], [1], [0, 0, 1, 1], [], []>} : vector<8x128xf32>, vector<128x128xf32>, vector<8x128xf32> -> vector<8x128xf32>
    %25 = tpu.reciprocal %22 {approx = true} : vector<8x1xf32> -> vector<8x1xf32>
    %26 = vector.broadcast %25 : vector<8x1xf32> to vector<8x128xf32>
    %27 = arith.mulf %24, %26 : vector<8x128xf32>
    %c0_13 = arith.constant 0 : index
    %c0_14 = arith.constant 0 : index
    %c0_15 = arith.constant 0 : index
    %28 = vector.load %arg5[%c0_13, %c0_14, %c0_15] : memref<1x8x128xf32, #tpu.memory_space<vmem>>, vector<1x8x128xf32>
    %29 = vector.shape_cast %28 : vector<1x8x128xf32> to vector<8x128xf32>
    %30 = vector.shape_cast %27 : vector<8x128xf32> to vector<1x8x128xf32>
    tpu.vector_store %arg5[%c0_13, %c0_14, %c0_15], %30 {strides = array<i32>} : memref<1x8x128xf32, #tpu.memory_space<vmem>>, vector<1x8x128xf32>,
    return
  }
  func.func @transform_0(%arg0: i32, %arg1: i32) -> (i32, i32, i32) {
    %c0_i32 = arith.constant 0 : i32
    %c0_i32_0 = arith.constant 0 : i32
    return %arg0, %arg1, %c0_i32 : i32, i32, i32
  }
  func.func @transform_1(%arg0: i32, %arg1: i32) -> (i32, i32) {
    %c0_i32 = arith.constant 0 : i32
    %c0_i32_0 = arith.constant 0 : i32
    %c0_i32_1 = arith.constant 0 : i32
    return %c0_i32, %c0_i32_0 : i32, i32
  }
  func.func @transform_2(%arg0: i32, %arg1: i32) -> (i32, i32) {
    %c0_i32 = arith.constant 0 : i32
    %c0_i32_0 = arith.constant 0 : i32
    %c0_i32_1 = arith.constant 0 : i32
    return %c0_i32, %c0_i32_0 : i32, i32
  }
  func.func @transform_3(%arg0: i32, %arg1: i32) -> (i32, i32, i32) {
    %c0_i32 = arith.constant 0 : i32
    %c0_i32_0 = arith.constant 0 : i32
    return %arg0, %arg1, %c0_i32 : i32, i32, i32
  }
}

</mosaic_0001>

<bundles_post_ra>
// kernel: tpu_custom_call.1
= control target key start
LH: loop header
LB: loop body
LE: loop exit
PB: predicated region body
PF: predicated region fallthrough
CT: control target
= control target key end

     0   :  { %8 = vsyncpa [#allocation3], 0  ;;  %s1276_s0 = inlined_call_operand.hbm [shape: f32[2,8,128], index: 0, kind: input, shape index: {}]   ;;  %s1277_s1 = inlined_call_operand.hbm [shape: f32[128,128], index: 1, kind: input, shape index: {}]   ;;  %s1278_s2 = inlined_call_operand.hbm [shape: f32[128,128], index: 2, kind: input, shape index: {}]   ;;  %s1279_s3 = inlined_call_operand.hbm [shape: f32[2,8,128], index: 3, kind: output, shape index: {}]  }
   0x1   :  { %10 = vsyncpa [#allocation3 + $0x1], 0 }
   0x2   :  { %11 = vsyncpa [#allocation6], 0 }
   0x3   :  { %12 = vsyncpa [#allocation4], 0 }
   0x4   :  { %14 = vsyncpa [#allocation4 + $0x1], 0  ;;  %s1003_s12 = smov 0   ;;  %s1005_s13 = smov 0  }
   0x5   :  { %s1007_s14 = smov 0   ;;  %s1009_s15 = smov 0  }
   0x6   :  { %s1011_s16 = smov 0   ;;  %s1013_s17 = smov 0  }
   0x7 LB: > { %s539_s18 = sadd.s32 4294967295, %s972_s17   ;;  %s540_s19 = sadd.s32 4294967294, %s972_s17   ;;  %s972_s17 = sphi %s1013_s17, %s20_s17   ;;  %s968_s16 = sphi %s1011_s16, %s1301_s16   ;;  %s964_s15 = sphi %s1009_s15, %s1300_s15   ;;  %s960_s14 = sphi %s1007_s14, %s1299_s14   ;;  %s956_s13 = sphi %s1005_s13, %s1298_s13   ;;  %s952_s12 = sphi %s1003_s12, %s1297_s12  }
   0x8   : > { %p54_p0 = scmp.ne.s32.totalorder %s956_s13, %s952_s12  ;;  %p1037_p1 = scmp.eq.s32.totalorder %s539_s18, 0 }
   0x9   : > { %p1041_p2 = scmp.eq.s32.totalorder %s539_s18, 1  ;;  %p128_p3 = scmp.eq.s32.totalorder %s540_s19, 1 }
   0xa   : > { %s1284_s20 = scalar_select %p1037_p1, 1, 0 }
   0xb   : > { %p1047_p4 = por %p1037_p1, %p54_p0  ;;  %p541_p5 = scmp.ge.s32.totalorder %s972_s17, 1 }
   0xc   : > { %p1052_p6 = por %p128_p3, %p54_p0  ;;  %p135_p7 = scmp.lt.s32.totalorder %s972_s17, 3 }
   0xd   : > { %s1286_s22 = scalar_select %p1047_p4, 1, 0 }
   0xe   : > { %s1287_s23 = scalar_select %p1052_p6, 1, 0 }
   0xf   : > { %p1057_p8 = pnand %p541_p5, %p135_p7  ;;  %s974_s25 = smov [#allocation5]  }
  0x10   : > { %s147_s26 = sshll.u32 %s974_s25, 4  ;;  %s975_s28 = smov [#allocation7]   ;;  %s1061_s26 = int_to_ptr.vmem [resolvable:$true] %s147_s26 }
  0x11   : > { %p720_p9 = pneg %p1057_p8  ;;  %s160_s29 = sshll.u32 %s975_s28, 4  ;;  %s1072_s29 = int_to_ptr.vmem [resolvable:$true] %s160_s29 }
  0x12   : > { %s800_s5 = scalar_lea.hbm %s1277_s1, 2048 }
  0x13   : > { %p1068_p11 = pnand %p720_p9, %p1037_p1  ;;  %p801_p12 = scmp.ne.s32.totalorder %s1277_s1, %s800_s5 }
  0x14   : > { %p807_p5 = scmp.lt.u32.totalorder %s800_s5, %s1277_s1 }
  0x15   : > { %p802_p13 = pneg %p1068_p11 }
  0x17   : > { %p803_p0 = pnand %p802_p13, %p801_p12 }
  0x19   : > { %p804_p3 = pneg %p803_p0 }
  0x1b   : > { %p809_p7 = pnand %p807_p5, %p804_p3 }
  0x1d   : > { %812 = shalt.err (!%p809_p7)
}
  0x1e   : > { %s813_s10 = scalar_lea.vmem %s1061_s26, 2048  ;;  %p821_p1 = scmp.lt.s32.totalorder %s1061_s26, %s1061_s26 }
  0x1f   : > { %p814_p9 = scmp.ne.s32.totalorder %s1061_s26, %s813_s10  ;;  %p822_p12 = scmp.lt.s32.totalorder %s813_s10, %s813_s10 }
  0x21   : > { %p816_p10 = pnand %p814_p9, %p802_p13  ;;  %p823_p0 = por %p822_p12, %p821_p1 }
  0x23   : > { %p817_p6 = pneg %p816_p10 }
  0x25   : > { %p824_p4 = pnand %p823_p0, %p817_p6 }
  0x27   : > { %827 = shalt.err (!%p824_p4)
}
  0x28   : > { %s976_s11 = smov 128   ;;  %s977_s18 = smov 8  }
  0x29   : > { %723 = dma.hbm_to_vmem [thread:$0]  (!%p1068_p11), %s1277_s1, 2048, %s1061_s26, [#allocation6], %s976_s11, %s976_s11, %s977_s18  }
  0x2a   : > { %s828_s4 = scalar_lea.hbm %s1278_s2, 2048 }
  0x2b   : > { %p829_p1 = scmp.ne.s32.totalorder %s1278_s2, %s828_s4  ;;  %p835_p10 = scmp.lt.u32.totalorder %s828_s4, %s1278_s2 }
  0x2d   : > { %p831_p4 = pnand %p829_p1, %p802_p13 }
  0x2f   : > { %p832_p6 = pneg %p831_p4 }
  0x31   : > { %p837_p3 = pnand %p835_p10, %p832_p6 }
  0x33   : > { %840 = shalt.err (!%p837_p3)
}
  0x34   : > { %s841_s26 = scalar_lea.vmem %s1072_s29, 2048  ;;  %p849_p12 = scmp.lt.s32.totalorder %s1072_s29, %s1072_s29 }
  0x35   : > { %p842_p5 = scmp.ne.s32.totalorder %s1072_s29, %s841_s26  ;;  %p850_p0 = scmp.lt.s32.totalorder %s841_s26, %s841_s26 }
  0x37   : > { %p844_p7 = pnand %p842_p5, %p802_p13  ;;  %p851_p1 = por %p850_p0, %p849_p12 }
  0x39   : > { %p845_p9 = pneg %p844_p7 }
  0x3b   : > { %p852_p4 = pnand %p851_p1, %p845_p9 }
  0x3d   : > { %855 = shalt.err (!%p852_p4)
}
  0x3e   : > { %726 = dma.hbm_to_vmem [thread:$0]  (!%p1068_p11), %s1278_s2, 2048, %s1072_s29, [#allocation6], %s976_s11, %s976_s11, %s977_s18  }
  0x3f   : > { %s32_s19 = sadd.s32 1, %s968_s16  ;;  %s41_s25 = sadd.s32 1, %s960_s14 }
  0x40   : > { %p34_p13 = scmp.ge.s32.totalorder %s32_s19, 2  ;;  %p48_p6 = scmp.ne.s32.totalorder %s960_s14, %s956_s13 }
  0x41   : > { %p49_p10 = scmp.eq.s32.totalorder %s972_s17, 0  ;;  %p737_p3 = scmp.lt.s32.totalorder %s972_s17, 2 }
  0x42   : > { %s1303_s19 = smov (%p34_p13, %s32_s19), 0  ;;  %p1136_p7 = por %p1041_p2, %p48_p6 }
  0x43   : > { %p50_p5 = por %p49_p10, %p48_p6  ;;  %s36_s28 = ssub.s32 %s968_s16, %s1303_s19 }
  0x44   : > { %s1290_s27 = scalar_select %p1136_p7, 1, 0 }
  0x45   : > { %s174_s30 = sand.u32 1, %s960_s14   ;;  %p39_p9 = scmp.eq.s32.totalorder %s36_s28, 0 }
  0x46   : > { %s545_s29 = sshll.u32 %s174_s30, 3  ;;  %s546_s11 = sshll.u32 %s968_s16, 7 }
  0x47   : > { %s1145_s18 = scalar_select %p39_p9, %s960_s14, %s41_s25  }
  0x48   : > { %s1150_s6 = scalar_lea.hbm %s1276_s0, %s546_s11  ;;  %s178_s21 = scalar_lea.vmem [#allocation2], %s545_s29 }
  0x49   : > { %s186_s7 = sshll.u32 %s178_s21, 4  ;;  %p1154_p2 = pnand %p737_p3, %p50_p5  ;;  %s1158_s7 = int_to_ptr.vmem [resolvable:$true] %s186_s7 }
  0x4a   : > { %s175_s26 = scalar_lea.sflag [#allocation3], %s174_s30  ;;  %s856_s9 = scalar_lea.hbm %s1150_s6, 128 }
  0x4b   : > { %p857_p11 = scmp.ne.s32.totalorder %s1150_s6, %s856_s9  ;;  %p858_p12 = pneg %p1154_p2 }
  0x4c   : > { %s861_s28 = scalar_lea.hbm %s1276_s0, 256  ;;  %p862_p4 = scmp.lt.u32.totalorder %s1150_s6, %s1276_s0 }
  0x4d   : > { %p859_p0 = pnand %p858_p12, %p857_p11  ;;  %p863_p13 = scmp.lt.u32.totalorder %s861_s28, %s856_s9 }
  0x4e   : > { %p865_p10 = scmp.lt.u32.totalorder %s856_s9, %s1150_s6 }
  0x4f   : > { %p860_p1 = pneg %p859_p0  ;;  %p864_p6 = por %p863_p13, %p862_p4 }
  0x51   : > { %p866_p3 = por %p865_p10, %p864_p6 }
  0x53   : > { %p867_p5 = pnand %p866_p3, %p860_p1 }
  0x55   : > { %870 = shalt.err (!%p867_p5)
}
  0x56   : > { %s871_s30 = scalar_lea.vmem %s1158_s7, 128  ;;  %s978_s4 = smov [#allocation2]  }
  0x57   : > { %p872_p9 = scmp.ne.s32.totalorder %s1158_s7, %s871_s30  ;;  %s876_s5 = sshll.u32 %s978_s4, 4  ;;  %s877_s5 = int_to_ptr.vmem [resolvable:$false] %s876_s5 }
  0x58   : > { %s878_s21 = scalar_lea.vmem %s877_s5, 256  ;;  %p879_p7 = scmp.lt.s32.totalorder %s1158_s7, %s877_s5 }
  0x59   : > { %p874_p11 = pnand %p872_p9, %p858_p12  ;;  %p880_p4 = scmp.lt.s32.totalorder %s878_s21, %s871_s30 }
  0x5b   : > { %p875_p0 = pneg %p874_p11  ;;  %p881_p13 = por %p880_p4, %p879_p7 }
  0x5d   : > { %p882_p6 = pnand %p881_p13, %p875_p0 }
  0x5f   : > { %885 = shalt.err (!%p882_p6)
}
  0x60   : > { %730 = dma.hbm_to_vmem [thread:$0]  (!%p1154_p2), %s1150_s6, 128, %s1158_s7, %s175_s26  }
  0x61   : > { %195 = sbr.rel (%p1057_p8) target bundleno = 775 (0x307), region = 32  ;;  %s1188_s9 = sand.u32 (!%p1057_p8), 1, %s956_s13  }
  0x62   : > { %s548_s10 = sshll.u32 (!%p1057_p8), %s1188_s9, 3  ;;  %s198_s25 = scalar_lea.sflag (!%p1057_p8), [#allocation3], %s1188_s9 }
  0x63   : > { %s1194_s28 = scalar_lea.vmem (!%p1057_p8), [#allocation2], %s548_s10  ;;  %p1292_p7 = scmp.ne.s32.totalorder (!%p1057_p8), %s1286_s22, 0 }
  0x68   : > { %939 = dma.done.wait (%p1292_p7), %s198_s25, 128  }
  0x69   : > { %941 = vsyncadd (%p1292_p7), %s198_s25, 4294967168  ;;  %p1293_p2 = scmp.ne.s32.totalorder %s1284_s20, 0 }
  0x6b   : > { %943 = dma.done.wait (%p1293_p2), [#allocation6], 4096  }
  0x6c   : > { %945 = vsyncadd (%p1293_p2), [#allocation6], 4294963200  ;;  %v979_v0 = vmov 0.0|0.0   ;;  %vm980_vm0 = vmmov 0   ;;  %v981_v1 = vmov 0.0   ;;  %v234_v2 = vld [vmem:[#allocation5] sm:$0xff]  ;;  %v323_v40 = vlaneseq }
  0x6d   : > { %660 = vmatprep.subr.bf16.mxu0 %v979_v0  ;;  %622 = vmatprep.mubr.msk.f32.mxu0 %vm980_vm0, %v981_v1  ;;  %v235_v3 = vld [vmem:[#allocation5 + $0x8] sm:$0xff]  ;;  %v236_v5 = vld [vmem:[#allocation5 + $0x10] sm:$0xff]  ;;  %v237_v6 = vld [vmem:[#allocation5 + $0x18] sm:$0xff]  ;;  %s553_s20 = sshll.u32 %s964_s15, 7  ;;  %s231_s22 = scalar_lea.vmem [#allocation8], %s548_s10 }
  0x6e   : > { %684 = vmatprep.subr.bf16.mxu1 %v979_v0  ;;  %657 = vmatprep.mubr.msk.f32.mxu1 %vm980_vm0, %v981_v1  ;;  %v661_v4 = vpack.c.bf16 %v235_v3, %v234_v2  ;;  %v664_v7 = vpack.c.bf16 %v237_v6, %v236_v5  ;;  %v238_v8 = vld [vmem:[#allocation5 + $0x20] sm:$0xff]  ;;  %v239_v9 = vld [vmem:[#allocation5 + $0x28] sm:$0xff]  ;;  %v240_v11 = vld [vmem:[#allocation5 + $0x30] sm:$0xff]  ;;  %v324_v41 = vand.u32 127, %v323_v40  ;;  %s438_s24 = sshll.u32 %s231_s22, 4  ;;  %s1227_s8 = scalar_lea.hbm %s1279_s3, %s553_s20  ;;  %s1229_s24 = int_to_ptr.vmem [resolvable:$true] %s438_s24 }
  0x6f   : > { %v667_v10 = vpack.c.bf16 %v239_v9, %v238_v8  ;;  %v241_v12 = vld [vmem:[#allocation5 + $0x38] sm:$0xff]  ;;  %v242_v14 = vld [vmem:[#allocation5 + $0x40] sm:$0xff]  ;;  %v243_v15 = vld [vmem:[#allocation5 + $0x48] sm:$0xff]  ;;  %s424_s26 = scalar_lea.sflag [#allocation4], %s1188_s9  ;;  %s886_s15 = scalar_lea.vmem %s1229_s24, 128 }
  0x70   : > { %662 = vmatpush3.bf16.xpose.msra.mxu0 %v661_v4  ;;  %v670_v13 = vpack.c.bf16 %v241_v12, %v240_v11  ;;  %v673_v16 = vpack.c.bf16 %v243_v15, %v242_v14  ;;  %v244_v17 = vld [vmem:[#allocation5 + $0x50] sm:$0xff]  ;;  %v245_v18 = vld [vmem:[#allocation5 + $0x58] sm:$0xff]  ;;  %v246_v20 = vld [vmem:[#allocation5 + $0x60] sm:$0xff]  ;;  %vm325_vm1 = vcmp.lt.s32.totalorder %v324_v41, 8  ;;  %p887_p8 = scmp.ne.s32.totalorder %s1229_s24, %s886_s15  ;;  %p1294_p12 = scmp.ne.s32.totalorder %s1290_s27, 0 }
  0x71   : > { %663 = vmatprep.subr.bf16.mxu0 %v979_v0  ;;  %v676_v19 = vpack.c.bf16 %v245_v18, %v244_v17  ;;  %v247_v21 = vld [vmem:[#allocation5 + $0x68] sm:$0xff]  ;;  %v248_v23 = vld [vmem:[#allocation5 + $0x70] sm:$0xff]  ;;  %v249_v24 = vld [vmem:[#allocation5 + $0x78] sm:$0xff]  ;;  %s982_s29 = smov [#allocation8]  }
  0x72   : > { %v679_v22 = vpack.c.bf16 %v247_v21, %v246_v20  ;;  %v682_v25 = vpack.c.bf16 %v249_v24, %v248_v23  ;;  %v232_v26 = vld [vmem:[%s1194_s28] sm:$0xff]  ;;  %v252_v28 = vld [vmem:[#allocation7] sm:$0xff]  ;;  %v335_v29 = vld [vmem:[#allocation7 + $0x8] sm:$0xff]  ;;  %p888_p1 = pnand %p887_p8, %p1294_p12  ;;  %s890_s11 = sshll.u32 %s982_s29, 4  ;;  %s891_s11 = int_to_ptr.vmem [resolvable:$false] %s890_s11 }
  0x73   : > { %v233_v27 = vmul.f32 0.35355338, %v232_v26  ;;  %v336_v30 = vld [vmem:[#allocation7 + $0x10] sm:$0xff]  ;;  %v337_v31 = vld [vmem:[#allocation7 + $0x18] sm:$0xff]  ;;  %v685_v32 = vpack.c.bf16 %v335_v29, %v252_v28  ;;  %v338_v34 = vld [vmem:[#allocation7 + $0x20] sm:$0xff]  ;;  %s892_s30 = scalar_lea.vmem %s891_s11, 256  ;;  %p893_p3 = scmp.lt.s32.totalorder %s1229_s24, %s891_s11 }
  0x74   : > { %v688_v33 = vpack.c.bf16 %v337_v31, %v336_v30  ;;  %v339_v35 = vld [vmem:[#allocation7 + $0x28] sm:$0xff]  ;;  %v340_v37 = vld [vmem:[#allocation7 + $0x30] sm:$0xff]  ;;  %v341_v38 = vld [vmem:[#allocation7 + $0x38] sm:$0xff]  ;;  %p889_p10 = pneg %p888_p1  ;;  %p894_p5 = scmp.lt.s32.totalorder %s892_s30, %s886_s15 }
  0x75   : > { %686 = vmatpush3.bf16.msra.mxu1 %v685_v32  ;;  %v691_v36 = vpack.c.bf16 %v339_v35, %v338_v34  ;;  %v694_v39 = vpack.c.bf16 %v341_v38, %v340_v37  ;;  %v342_v46 = vld [vmem:[#allocation7 + $0x40] sm:$0xff]  ;;  %v343_v47 = vld [vmem:[#allocation7 + $0x48] sm:$0xff]  ;;  %v344_v49 = vld [vmem:[#allocation7 + $0x50] sm:$0xff] }
  0x76   : > { %687 = vmatprep.subr.bf16.mxu1 %v979_v0  ;;  %v697_v48 = vpack.c.bf16 %v343_v47, %v342_v46  ;;  %v345_v50 = vld [vmem:[#allocation7 + $0x58] sm:$0xff]  ;;  %v346_v52 = vld [vmem:[#allocation7 + $0x60] sm:$0xff]  ;;  %v347_v53 = vld [vmem:[#allocation7 + $0x68] sm:$0xff]  ;;  %p895_p9 = por %p894_p5, %p893_p3 }
  0x77   : > { %v700_v51 = vpack.c.bf16 %v345_v50, %v344_v49  ;;  %v703_v54 = vpack.c.bf16 %v347_v53, %v346_v52  ;;  %v348_v55 = vld [vmem:[#allocation7 + $0x70] sm:$0xff]  ;;  %v349_v56 = vld [vmem:[#allocation7 + $0x78] sm:$0xff] }
  0x78   : > { %665 = vmatpush3.bf16.xpose.msra.mxu0 %v664_v7  ;;  %v706_v57 = vpack.c.bf16 %v349_v56, %v348_v55  ;;  %p896_p11 = pnand %p895_p9, %p889_p10 }
  0x79   : > { %666 = vmatprep.subr.bf16.mxu0 %v979_v0  ;;  %689 = vmatpush3.bf16.msra.mxu1 %v688_v33 }
  0x7a   : > { %690 = vmatprep.subr.bf16.mxu1 %v979_v0 }
  0x7d   : > { %692 = vmatpush3.bf16.msra.mxu1 %v691_v36 }
  0x7e   : > { %693 = vmatprep.subr.bf16.mxu1 %v979_v0 }
  0x80   : > { %668 = vmatpush3.bf16.xpose.msra.mxu0 %v667_v10 }
  0x81   : > { %669 = vmatprep.subr.bf16.mxu0 %v979_v0  ;;  %695 = vmatpush3.bf16.msra.mxu1 %v694_v39 }
  0x82   : > { %696 = vmatprep.subr.bf16.mxu1 %v979_v0 }
  0x85   : > { %698 = vmatpush3.bf16.msra.mxu1 %v697_v48 }
  0x86   : > { %699 = vmatprep.subr.bf16.mxu1 %v979_v0 }
  0x88   : > { %671 = vmatpush3.bf16.xpose.msra.mxu0 %v670_v13 }
  0x89   : > { %672 = vmatprep.subr.bf16.mxu0 %v979_v0  ;;  %701 = vmatpush3.bf16.msra.mxu1 %v700_v51 }
  0x8a   : > { %702 = vmatprep.subr.bf16.mxu1 %v979_v0 }
  0x8d   : > { %704 = vmatpush3.bf16.msra.mxu1 %v703_v54 }
  0x8e   : > { %705 = vmatprep.subr.bf16.mxu1 %v979_v0 }
  0x90   : > { %674 = vmatpush3.bf16.xpose.msra.mxu0 %v673_v16 }
  0x91   : > { %675 = vmatprep.subr.bf16.mxu0 %v979_v0  ;;  %707 = vmatpush3.bf16.msra.mxu1 %v706_v57 }
  0x98   : > { %677 = vmatpush3.bf16.xpose.msra.mxu0 %v676_v19 }
  0x99   : > { %678 = vmatprep.subr.bf16.mxu0 %v979_v0 }
  0xa0   : > { %680 = vmatpush3.bf16.xpose.msra.mxu0 %v679_v22 }
  0xa1   : > { %681 = vmatprep.subr.bf16.mxu0 %v979_v0 }
  0xa8   : > { %683 = vmatpush3.bf16.xpose.msra.mxu0 %v682_v25 }
  0xaf   : > { %623 = vmatmul.mubr.f32.vlgmr.msra.gmra.mrb[0].mxu0 %v233_v27 }
 0x182   : > { %v319_v42 = vpop.f32.mrb[0].mxu0 }
 0x183   : > { %v320_v43 = vadd.f32 %v319_v42, %v252_v28  ;;  %v624_v44 = vpop.f32.mrb[1].mxu0 }
 0x185   : > { %v326_v45 = vsel %vm325_vm1, %v320_v43, -1e+30 }
 0x186   : > { %327 = vmax.xlane.f32.xlu0 %v326_v45 }
 0x213   : > { %v328_v58 = vpop.xlane.xlu0 %327 }
 0x214   : > { %v329_v59 = vsub.f32 %v326_v45, %v328_v58 }
 0x216   : > { %v330_v60 = vmul.f32 1.442695, %v329_v59 }
 0x218   : > { %796 = vpow2.f32 %v330_v60 }
 0x222   : > { %v797_v61 = vpop.eup %796 }
 0x223   : > { %332 = vadd.xlane.f32.xlu0 %v797_v61  ;;  %658 = vmatmul.mubr.f32.vlgmr.msra.gmra.mrb[0].mxu1 %v797_v61 }
 0x2b0   : > { %v333_v62 = vpop.xlane.xlu0 %332 }
 0x2b1   : > { %798 = vrcp.f32 %v333_v62 }
 0x2bb   : > { %v799_v63 = vpop.eup %798 }
 0x2f6   : > { %v416_v1 = vpop.f32.mrb[0].mxu1 }
 0x2f7   : > { %v421_v2 = vmul.f32 %v799_v63, %v416_v1  ;;  %v659_v0 = vpop.f32.mrb[1].mxu1 }
 0x2f9   : > { %422 = vst [vmem:[%s231_s22] sm:$0xff] %v421_v2 }
 0x2fa   : > { %899 = shalt.err (!%p896_p11)
}
 0x2fb   : > { %s900_s4 = scalar_lea.hbm %s1227_s8, 128  ;;  %s904_s9 = scalar_lea.hbm %s1279_s3, 256 }
 0x2fc   : > { %p901_p0 = scmp.ne.s32.totalorder %s1227_s8, %s900_s4  ;;  %p905_p6 = scmp.lt.u32.totalorder %s1227_s8, %s1279_s3 }
 0x2fd   : > { %p906_p7 = scmp.lt.u32.totalorder %s904_s9, %s900_s4  ;;  %p908_p8 = scmp.lt.u32.totalorder %s900_s4, %s1227_s8 }
 0x2fe   : > { %p902_p4 = pnand %p901_p0, %p1294_p12 }
 0x2ff   : > { %p907_p2 = por %p906_p7, %p905_p6 }
 0x300   : > { %p903_p13 = pneg %p902_p4 }
 0x301   : > { %p909_p1 = por %p908_p8, %p907_p2 }
 0x303   : > { %p910_p10 = pnand %p909_p1, %p903_p13 }
 0x305   : > { %913 = shalt.err (!%p910_p10)
}
 0x306   : > { %718 = dma.vmem_to_hbm [thread:$0]  (%p1294_p12), %s1229_s24, 128, %s1227_s8, %s424_s26  }
 0x307 PF: > { %s450_s28 = sand.u32 1, %s952_s12   ;;  %p1295_p3 = scmp.ne.s32.totalorder %s1287_s23, 0 }
 0x308   : > { %p1296_p5 = scmp.ge.s32.totalorder %s972_s17, 2  ;;  %s451_s20 = scalar_lea.sflag [#allocation4], %s450_s28 }
 0x30a   : > { %p732_p9 = pnand %p1296_p5, %p1295_p3 }
 0x30c   : > { %947 = dma.done.wait (!%p732_p9), %s451_s20, 128  }
 0x30d   : > { %949 = vsyncadd (!%p732_p9), %s451_s20, 4294967168  ;;  %s20_s17 = sadd.s32 1, %s972_s17   ;;  %s1297_s12 = smov %s956_s13 }
 0x30e   : > { %p17_p11 = scmp.ge.s32.totalorder %s20_s17, 4   ;;  %s1298_s13 = smov %s960_s14 }
 0x30f   : > { %s1299_s14 = smov %s1145_s18  ;;  %s1300_s15 = smov %s968_s16 }
 0x310   : > { %s1301_s16 = smov %s1303_s19  ;;  %19 = sbr.rel (!%p17_p11) target bundleno = 7 (0x7), region = 86 }
 0x317   :  { %456 = vsyncpa [#allocation3], 1 }
 0x318   :  { %458 = vsyncpa [#allocation3 + $0x1], 1 }
 0x319   :  { %459 = vsyncpa [#allocation6], 1 }
 0x31a   :  { %460 = vsyncpa [#allocation4], 1 }
 0x31b   :  { %462 = vsyncpa [#allocation4 + $0x1], 1 }

// kernel: tpu_custom_call.1
= control target key start
LH: loop header
LB: loop body
LE: loop exit
PB: predicated region body
PF: predicated region fallthrough
CT: control target
= control target key end

     0   :  { %8 = vsyncpa [#allocation3], 0  ;;  %s1276_s0 = inlined_call_operand.hbm [shape: f32[2,8,128], index: 0, kind: input, shape index: {}]   ;;  %s1277_s1 = inlined_call_operand.hbm [shape: f32[128,128], index: 1, kind: input, shape index: {}]   ;;  %s1278_s2 = inlined_call_operand.hbm [shape: f32[128,128], index: 2, kind: input, shape index: {}]   ;;  %s1279_s3 = inlined_call_operand.hbm [shape: f32[2,8,128], index: 3, kind: output, shape index: {}]  }
   0x1   :  { %10 = vsyncpa [#allocation3 + $0x1], 0 }
   0x2   :  { %11 = vsyncpa [#allocation6], 0 }
   0x3   :  { %12 = vsyncpa [#allocation4], 0 }
   0x4   :  { %14 = vsyncpa [#allocation4 + $0x1], 0  ;;  %s1003_s12 = smov 0   ;;  %s1005_s13 = smov 0  }
   0x5   :  { %s1007_s14 = smov 0   ;;  %s1009_s15 = smov 0  }
   0x6   :  { %s1011_s16 = smov 0   ;;  %s1013_s17 = smov 0  }
   0x7 LB: > { %s539_s18 = sadd.s32 4294967295, %s972_s17   ;;  %s540_s19 = sadd.s32 4294967294, %s972_s17   ;;  %s972_s17 = sphi %s1013_s17, %s20_s17   ;;  %s968_s16 = sphi %s1011_s16, %s1301_s16   ;;  %s964_s15 = sphi %s1009_s15, %s1300_s15   ;;  %s960_s14 = sphi %s1007_s14, %s1299_s14   ;;  %s956_s13 = sphi %s1005_s13, %s1298_s13   ;;  %s952_s12 = sphi %s1003_s12, %s1297_s12  }
   0x8   : > { %p54_p0 = scmp.ne.s32.totalorder %s956_s13, %s952_s12  ;;  %p1037_p1 = scmp.eq.s32.totalorder %s539_s18, 0 }
   0x9   : > { %p1041_p2 = scmp.eq.s32.totalorder %s539_s18, 1  ;;  %p128_p3 = scmp.eq.s32.totalorder %s540_s19, 1 }
   0xa   : > { %s1284_s20 = scalar_select %p1037_p1, 1, 0 }
   0xb   : > { %p1047_p4 = por %p1037_p1, %p54_p0  ;;  %p541_p5 = scmp.ge.s32.totalorder %s972_s17, 1 }
   0xc   : > { %p1052_p6 = por %p128_p3, %p54_p0  ;;  %p135_p7 = scmp.lt.s32.totalorder %s972_s17, 3 }
   0xd   : > { %s1286_s22 = scalar_select %p1047_p4, 1, 0 }
   0xe   : > { %s1287_s23 = scalar_select %p1052_p6, 1, 0 }
   0xf   : > { %p1057_p8 = pnand %p541_p5, %p135_p7  ;;  %s974_s25 = smov [#allocation5]  }
  0x10   : > { %s147_s26 = sshll.u32 %s974_s25, 4  ;;  %s975_s28 = smov [#allocation7]   ;;  %s1061_s26 = int_to_ptr.vmem [resolvable:$true] %s147_s26 }
  0x11   : > { %p720_p9 = pneg %p1057_p8  ;;  %s160_s29 = sshll.u32 %s975_s28, 4  ;;  %s1072_s29 = int_to_ptr.vmem [resolvable:$true] %s160_s29 }
  0x12   : > { %s800_s5 = scalar_lea.hbm %s1277_s1, 2048 }
  0x13   : > { %p1068_p11 = pnand %p720_p9, %p1037_p1  ;;  %p801_p12 = scmp.ne.s32.totalorder %s1277_s1, %s800_s5 }
  0x14   : > { %p807_p5 = scmp.lt.u32.totalorder %s800_s5, %s1277_s1 }
  0x15   : > { %p802_p13 = pneg %p1068_p11 }
  0x17   : > { %p803_p0 = pnand %p802_p13, %p801_p12 }
  0x19   : > { %p804_p3 = pneg %p803_p0 }
  0x1b   : > { %p809_p7 = pnand %p807_p5, %p804_p3 }
  0x1d   : > { %812 = shalt.err (!%p809_p7)
}
  0x1e   : > { %s813_s10 = scalar_lea.vmem %s1061_s26, 2048  ;;  %p821_p1 = scmp.lt.s32.totalorder %s1061_s26, %s1061_s26 }
  0x1f   : > { %p814_p9 = scmp.ne.s32.totalorder %s1061_s26, %s813_s10  ;;  %p822_p12 = scmp.lt.s32.totalorder %s813_s10, %s813_s10 }
  0x21   : > { %p816_p10 = pnand %p814_p9, %p802_p13  ;;  %p823_p0 = por %p822_p12, %p821_p1 }
  0x23   : > { %p817_p6 = pneg %p816_p10 }
  0x25   : > { %p824_p4 = pnand %p823_p0, %p817_p6 }
  0x27   : > { %827 = shalt.err (!%p824_p4)
}
  0x28   : > { %s976_s11 = smov 128   ;;  %s977_s18 = smov 8  }
  0x29   : > { %723 = dma.hbm_to_vmem [thread:$0]  (!%p1068_p11), %s1277_s1, 2048, %s1061_s26, [#allocation6], %s976_s11, %s976_s11, %s977_s18  }
  0x2a   : > { %s828_s4 = scalar_lea.hbm %s1278_s2, 2048 }
  0x2b   : > { %p829_p1 = scmp.ne.s32.totalorder %s1278_s2, %s828_s4  ;;  %p835_p10 = scmp.lt.u32.totalorder %s828_s4, %s1278_s2 }
  0x2d   : > { %p831_p4 = pnand %p829_p1, %p802_p13 }
  0x2f   : > { %p832_p6 = pneg %p831_p4 }
  0x31   : > { %p837_p3 = pnand %p835_p10, %p832_p6 }
  0x33   : > { %840 = shalt.err (!%p837_p3)
}
  0x34   : > { %s841_s26 = scalar_lea.vmem %s1072_s29, 2048  ;;  %p849_p12 = scmp.lt.s32.totalorder %s1072_s29, %s1072_s29 }
  0x35   : > { %p842_p5 = scmp.ne.s32.totalorder %s1072_s29, %s841_s26  ;;  %p850_p0 = scmp.lt.s32.totalorder %s841_s26, %s841_s26 }
  0x37   : > { %p844_p7 = pnand %p842_p5, %p802_p13  ;;  %p851_p1 = por %p850_p0, %p849_p12 }
  0x39   : > { %p845_p9 = pneg %p844_p7 }
  0x3b   : > { %p852_p4 = pnand %p851_p1, %p845_p9 }
  0x3d   : > { %855 = shalt.err (!%p852_p4)
}
  0x3e   : > { %726 = dma.hbm_to_vmem [thread:$0]  (!%p1068_p11), %s1278_s2, 2048, %s1072_s29, [#allocation6], %s976_s11, %s976_s11, %s977_s18  }
  0x3f   : > { %s32_s19 = sadd.s32 1, %s968_s16  ;;  %s41_s25 = sadd.s32 1, %s960_s14 }
  0x40   : > { %p34_p13 = scmp.ge.s32.totalorder %s32_s19, 2  ;;  %p48_p6 = scmp.ne.s32.totalorder %s960_s14, %s956_s13 }
  0x41   : > { %p49_p10 = scmp.eq.s32.totalorder %s972_s17, 0  ;;  %p737_p3 = scmp.lt.s32.totalorder %s972_s17, 2 }
  0x42   : > { %s1303_s19 = smov (%p34_p13, %s32_s19), 0  ;;  %p1136_p7 = por %p1041_p2, %p48_p6 }
  0x43   : > { %p50_p5 = por %p49_p10, %p48_p6  ;;  %s36_s28 = ssub.s32 %s968_s16, %s1303_s19 }
  0x44   : > { %s1290_s27 = scalar_select %p1136_p7, 1, 0 }
  0x45   : > { %s174_s30 = sand.u32 1, %s960_s14   ;;  %p39_p9 = scmp.eq.s32.totalorder %s36_s28, 0 }
  0x46   : > { %s545_s29 = sshll.u32 %s174_s30, 3  ;;  %s546_s11 = sshll.u32 %s968_s16, 7 }
  0x47   : > { %s1145_s18 = scalar_select %p39_p9, %s960_s14, %s41_s25  }
  0x48   : > { %s1150_s6 = scalar_lea.hbm %s1276_s0, %s546_s11  ;;  %s178_s21 = scalar_lea.vmem [#allocation2], %s545_s29 }
  0x49   : > { %s186_s7 = sshll.u32 %s178_s21, 4  ;;  %p1154_p2 = pnand %p737_p3, %p50_p5  ;;  %s1158_s7 = int_to_ptr.vmem [resolvable:$true] %s186_s7 }
  0x4a   : > { %s175_s26 = scalar_lea.sflag [#allocation3], %s174_s30  ;;  %s856_s9 = scalar_lea.hbm %s1150_s6, 128 }
  0x4b   : > { %p857_p11 = scmp.ne.s32.totalorder %s1150_s6, %s856_s9  ;;  %p858_p12 = pneg %p1154_p2 }
  0x4c   : > { %s861_s28 = scalar_lea.hbm %s1276_s0, 256  ;;  %p862_p4 = scmp.lt.u32.totalorder %s1150_s6, %s1276_s0 }
  0x4d   : > { %p859_p0 = pnand %p858_p12, %p857_p11  ;;  %p863_p13 = scmp.lt.u32.totalorder %s861_s28, %s856_s9 }
  0x4e   : > { %p865_p10 = scmp.lt.u32.totalorder %s856_s9, %s1150_s6 }
  0x4f   : > { %p860_p1 = pneg %p859_p0  ;;  %p864_p6 = por %p863_p13, %p862_p4 }
  0x51   : > { %p866_p3 = por %p865_p10, %p864_p6 }
  0x53   : > { %p867_p5 = pnand %p866_p3, %p860_p1 }
  0x55   : > { %870 = shalt.err (!%p867_p5)
}
  0x56   : > { %s871_s30 = scalar_lea.vmem %s1158_s7, 128  ;;  %s978_s4 = smov [#allocation2]  }
  0x57   : > { %p872_p9 = scmp.ne.s32.totalorder %s1158_s7, %s871_s30  ;;  %s876_s5 = sshll.u32 %s978_s4, 4  ;;  %s877_s5 = int_to_ptr.vmem [resolvable:$false] %s876_s5 }
  0x58   : > { %s878_s21 = scalar_lea.vmem %s877_s5, 256  ;;  %p879_p7 = scmp.lt.s32.totalorder %s1158_s7, %s877_s5 }
  0x59   : > { %p874_p11 = pnand %p872_p9, %p858_p12  ;;  %p880_p4 = scmp.lt.s32.totalorder %s878_s21, %s871_s30 }
  0x5b   : > { %p875_p0 = pneg %p874_p11  ;;  %p881_p13 = por %p880_p4, %p879_p7 }
  0x5d   : > { %p882_p6 = pnand %p881_p13, %p875_p0 }
  0x5f   : > { %885 = shalt.err (!%p882_p6)
}
  0x60   : > { %730 = dma.hbm_to_vmem [thread:$0]  (!%p1154_p2), %s1150_s6, 128, %s1158_s7, %s175_s26  }
  0x61   : > { %195 = sbr.rel (%p1057_p8) target bundleno = 775 (0x307), region = 32  ;;  %s1188_s9 = sand.u32 (!%p1057_p8), 1, %s956_s13  }
  0x62   : > { %s548_s10 = sshll.u32 (!%p1057_p8), %s1188_s9, 3  ;;  %s198_s25 = scalar_lea.sflag (!%p1057_p8), [#allocation3], %s1188_s9 }
  0x63   : > { %s1194_s28 = scalar_lea.vmem (!%p1057_p8), [#allocation2], %s548_s10  ;;  %p1292_p7 = scmp.ne.s32.totalorder (!%p1057_p8), %s1286_s22, 0 }
  0x68   : > { %939 = dma.done.wait (%p1292_p7), %s198_s25, 128  }
  0x69   : > { %941 = vsyncadd (%p1292_p7), %s198_s25, 4294967168  ;;  %p1293_p2 = scmp.ne.s32.totalorder %s1284_s20, 0 }
  0x6b   : > { %943 = dma.done.wait (%p1293_p2), [#allocation6], 4096  }
  0x6c   : > { %945 = vsyncadd (%p1293_p2), [#allocation6], 4294963200  ;;  %v979_v0 = vmov 0.0|0.0   ;;  %vm980_vm0 = vmmov 0   ;;  %v981_v1 = vmov 0.0   ;;  %v234_v2 = vld [vmem:[#allocation5] sm:$0xff]  ;;  %v323_v40 = vlaneseq }
  0x6d   : > { %660 = vmatprep.subr.bf16.mxu0 %v979_v0  ;;  %622 = vmatprep.mubr.msk.f32.mxu0 %vm980_vm0, %v981_v1  ;;  %v235_v3 = vld [vmem:[#allocation5 + $0x8] sm:$0xff]  ;;  %v236_v5 = vld [vmem:[#allocation5 + $0x10] sm:$0xff]  ;;  %v237_v6 = vld [vmem:[#allocation5 + $0x18] sm:$0xff]  ;;  %s553_s20 = sshll.u32 %s964_s15, 7  ;;  %s231_s22 = scalar_lea.vmem [#allocation8], %s548_s10 }
  0x6e   : > { %684 = vmatprep.subr.bf16.mxu1 %v979_v0  ;;  %657 = vmatprep.mubr.msk.f32.mxu1 %vm980_vm0, %v981_v1  ;;  %v661_v4 = vpack.c.bf16 %v235_v3, %v234_v2  ;;  %v664_v7 = vpack.c.bf16 %v237_v6, %v236_v5  ;;  %v238_v8 = vld [vmem:[#allocation5 + $0x20] sm:$0xff]  ;;  %v239_v9 = vld [vmem:[#allocation5 + $0x28] sm:$0xff]  ;;  %v240_v11 = vld [vmem:[#allocation5 + $0x30] sm:$0xff]  ;;  %v324_v41 = vand.u32 127, %v323_v40  ;;  %s438_s24 = sshll.u32 %s231_s22, 4  ;;  %s1227_s8 = scalar_lea.hbm %s1279_s3, %s553_s20  ;;  %s1229_s24 = int_to_ptr.vmem [resolvable:$true] %s438_s24 }
  0x6f   : > { %v667_v10 = vpack.c.bf16 %v239_v9, %v238_v8  ;;  %v241_v12 = vld [vmem:[#allocation5 + $0x38] sm:$0xff]  ;;  %v242_v14 = vld [vmem:[#allocation5 + $0x40] sm:$0xff]  ;;  %v243_v15 = vld [vmem:[#allocation5 + $0x48] sm:$0xff]  ;;  %s424_s26 = scalar_lea.sflag [#allocation4], %s1188_s9  ;;  %s886_s15 = scalar_lea.vmem %s1229_s24, 128 }
  0x70   : > { %662 = vmatpush3.bf16.xpose.msra.mxu0 %v661_v4  ;;  %v670_v13 = vpack.c.bf16 %v241_v12, %v240_v11  ;;  %v673_v16 = vpack.c.bf16 %v243_v15, %v242_v14  ;;  %v244_v17 = vld [vmem:[#allocation5 + $0x50] sm:$0xff]  ;;  %v245_v18 = vld [vmem:[#allocation5 + $0x58] sm:$0xff]  ;;  %v246_v20 = vld [vmem:[#allocation5 + $0x60] sm:$0xff]  ;;  %vm325_vm1 = vcmp.lt.s32.totalorder %v324_v41, 8  ;;  %p887_p8 = scmp.ne.s32.totalorder %s1229_s24, %s886_s15  ;;  %p1294_p12 = scmp.ne.s32.totalorder %s1290_s27, 0 }
  0x71   : > { %663 = vmatprep.subr.bf16.mxu0 %v979_v0  ;;  %v676_v19 = vpack.c.bf16 %v245_v18, %v244_v17  ;;  %v247_v21 = vld [vmem:[#allocation5 + $0x68] sm:$0xff]  ;;  %v248_v23 = vld [vmem:[#allocation5 + $0x70] sm:$0xff]  ;;  %v249_v24 = vld [vmem:[#allocation5 + $0x78] sm:$0xff]  ;;  %s982_s29 = smov [#allocation8]  }
  0x72   : > { %v679_v22 = vpack.c.bf16 %v247_v21, %v246_v20  ;;  %v682_v25 = vpack.c.bf16 %v249_v24, %v248_v23  ;;  %v232_v26 = vld [vmem:[%s1194_s28] sm:$0xff]  ;;  %v252_v28 = vld [vmem:[#allocation7] sm:$0xff]  ;;  %v335_v29 = vld [vmem:[#allocation7 + $0x8] sm:$0xff]  ;;  %p888_p1 = pnand %p887_p8, %p1294_p12  ;;  %s890_s11 = sshll.u32 %s982_s29, 4  ;;  %s891_s11 = int_to_ptr.vmem [resolvable:$false] %s890_s11 }
  0x73   : > { %v233_v27 = vmul.f32 0.35355338, %v232_v26  ;;  %v336_v30 = vld [vmem:[#allocation7 + $0x10] sm:$0xff]  ;;  %v337_v31 = vld [vmem:[#allocation7 + $0x18] sm:$0xff]  ;;  %v685_v32 = vpack.c.bf16 %v335_v29, %v252_v28  ;;  %v338_v34 = vld [vmem:[#allocation7 + $0x20] sm:$0xff]  ;;  %s892_s30 = scalar_lea.vmem %s891_s11, 256  ;;  %p893_p3 = scmp.lt.s32.totalorder %s1229_s24, %s891_s11 }
  0x74   : > { %v688_v33 = vpack.c.bf16 %v337_v31, %v336_v30  ;;  %v339_v35 = vld [vmem:[#allocation7 + $0x28] sm:$0xff]  ;;  %v340_v37 = vld [vmem:[#allocation7 + $0x30] sm:$0xff]  ;;  %v341_v38 = vld [vmem:[#allocation7 + $0x38] sm:$0xff]  ;;  %p889_p10 = pneg %p888_p1  ;;  %p894_p5 = scmp.lt.s32.totalorder %s892_s30, %s886_s15 }
  0x75   : > { %686 = vmatpush3.bf16.msra.mxu1 %v685_v32  ;;  %v691_v36 = vpack.c.bf16 %v339_v35, %v338_v34  ;;  %v694_v39 = vpack.c.bf16 %v341_v38, %v340_v37  ;;  %v342_v46 = vld [vmem:[#allocation7 + $0x40] sm:$0xff]  ;;  %v343_v47 = vld [vmem:[#allocation7 + $0x48] sm:$0xff]  ;;  %v344_v49 = vld [vmem:[#allocation7 + $0x50] sm:$0xff] }
  0x76   : > { %687 = vmatprep.subr.bf16.mxu1 %v979_v0  ;;  %v697_v48 = vpack.c.bf16 %v343_v47, %v342_v46  ;;  %v345_v50 = vld [vmem:[#allocation7 + $0x58] sm:$0xff]  ;;  %v346_v52 = vld [vmem:[#allocation7 + $0x60] sm:$0xff]  ;;  %v347_v53 = vld [vmem:[#allocation7 + $0x68] sm:$0xff]  ;;  %p895_p9 = por %p894_p5, %p893_p3 }
  0x77   : > { %v700_v51 = vpack.c.bf16 %v345_v50, %v344_v49  ;;  %v703_v54 = vpack.c.bf16 %v347_v53, %v346_v52  ;;  %v348_v55 = vld [vmem:[#allocation7 + $0x70] sm:$0xff]  ;;  %v349_v56 = vld [vmem:[#allocation7 + $0x78] sm:$0xff] }
  0x78   : > { %665 = vmatpush3.bf16.xpose.msra.mxu0 %v664_v7  ;;  %v706_v57 = vpack.c.bf16 %v349_v56, %v348_v55  ;;  %p896_p11 = pnand %p895_p9, %p889_p10 }
  0x79   : > { %666 = vmatprep.subr.bf16.mxu0 %v979_v0  ;;  %689 = vmatpush3.bf16.msra.mxu1 %v688_v33 }
  0x7a   : > { %690 = vmatprep.subr.bf16.mxu1 %v979_v0 }
  0x7d   : > { %692 = vmatpush3.bf16.msra.mxu1 %v691_v36 }
  0x7e   : > { %693 = vmatprep.subr.bf16.mxu1 %v979_v0 }
  0x80   : > { %668 = vmatpush3.bf16.xpose.msra.mxu0 %v667_v10 }
  0x81   : > { %669 = vmatprep.subr.bf16.mxu0 %v979_v0  ;;  %695 = vmatpush3.bf16.msra.mxu1 %v694_v39 }
  0x82   : > { %696 = vmatprep.subr.bf16.mxu1 %v979_v0 }
  0x85   : > { %698 = vmatpush3.bf16.msra.mxu1 %v697_v48 }
  0x86   : > { %699 = vmatprep.subr.bf16.mxu1 %v979_v0 }
  0x88   : > { %671 = vmatpush3.bf16.xpose.msra.mxu0 %v670_v13 }
  0x89   : > { %672 = vmatprep.subr.bf16.mxu0 %v979_v0  ;;  %701 = vmatpush3.bf16.msra.mxu1 %v700_v51 }
  0x8a   : > { %702 = vmatprep.subr.bf16.mxu1 %v979_v0 }
  0x8d   : > { %704 = vmatpush3.bf16.msra.mxu1 %v703_v54 }
  0x8e   : > { %705 = vmatprep.subr.bf16.mxu1 %v979_v0 }
  0x90   : > { %674 = vmatpush3.bf16.xpose.msra.mxu0 %v673_v16 }
  0x91   : > { %675 = vmatprep.subr.bf16.mxu0 %v979_v0  ;;  %707 = vmatpush3.bf16.msra.mxu1 %v706_v57 }
  0x98   : > { %677 = vmatpush3.bf16.xpose.msra.mxu0 %v676_v19 }
  0x99   : > { %678 = vmatprep.subr.bf16.mxu0 %v979_v0 }
  0xa0   : > { %680 = vmatpush3.bf16.xpose.msra.mxu0 %v679_v22 }
  0xa1   : > { %681 = vmatprep.subr.bf16.mxu0 %v979_v0 }
  0xa8   : > { %683 = vmatpush3.bf16.xpose.msra.mxu0 %v682_v25 }
  0xaf   : > { %623 = vmatmul.mubr.f32.vlgmr.msra.gmra.mrb[0].mxu0 %v233_v27 }
 0x182   : > { %v319_v42 = vpop.f32.mrb[0].mxu0 }
 0x183   : > { %v320_v43 = vadd.f32 %v319_v42, %v252_v28  ;;  %v624_v44 = vpop.f32.mrb[1].mxu0 }
 0x185   : > { %v326_v45 = vsel %vm325_vm1, %v320_v43, -1e+30 }
 0x186   : > { %327 = vmax.xlane.f32.xlu0 %v326_v45 }
 0x213   : > { %v328_v58 = vpop.xlane.xlu0 %327 }
 0x214   : > { %v329_v59 = vsub.f32 %v326_v45, %v328_v58 }
 0x216   : > { %v330_v60 = vmul.f32 1.442695, %v329_v59 }
 0x218   : > { %796 = vpow2.f32 %v330_v60 }
 0x222   : > { %v797_v61 = vpop.eup %796 }
 0x223   : > { %332 = vadd.xlane.f32.xlu0 %v797_v61  ;;  %658 = vmatmul.mubr.f32.vlgmr.msra.gmra.mrb[0].mxu1 %v797_v61 }
 0x2b0   : > { %v333_v62 = vpop.xlane.xlu0 %332 }
 0x2b1   : > { %798 = vrcp.f32 %v333_v62 }
 0x2bb   : > { %v799_v63 = vpop.eup %798 }
 0x2f6   : > { %v416_v1 = vpop.f32.mrb[0].mxu1 }
 0x2f7   : > { %v421_v2 = vmul.f32 %v799_v63, %v416_v1  ;;  %v659_v0 = vpop.f32.mrb[1].mxu1 }
 0x2f9   : > { %422 = vst [vmem:[%s231_s22] sm:$0xff] %v421_v2 }
 0x2fa   : > { %899 = shalt.err (!%p896_p11)
}
 0x2fb   : > { %s900_s4 = scalar_lea.hbm %s1227_s8, 128  ;;  %s904_s9 = scalar_lea.hbm %s1279_s3, 256 }
 0x2fc   : > { %p901_p0 = scmp.ne.s32.totalorder %s1227_s8, %s900_s4  ;;  %p905_p6 = scmp.lt.u32.totalorder %s1227_s8, %s1279_s3 }
 0x2fd   : > { %p906_p7 = scmp.lt.u32.totalorder %s904_s9, %s900_s4  ;;  %p908_p8 = scmp.lt.u32.totalorder %s900_s4, %s1227_s8 }
 0x2fe   : > { %p902_p4 = pnand %p901_p0, %p1294_p12 }
 0x2ff   : > { %p907_p2 = por %p906_p7, %p905_p6 }
 0x300   : > { %p903_p13 = pneg %p902_p4 }
 0x301   : > { %p909_p1 = por %p908_p8, %p907_p2 }
 0x303   : > { %p910_p10 = pnand %p909_p1, %p903_p13 }
 0x305   : > { %913 = shalt.err (!%p910_p10)
}
 0x306   : > { %718 = dma.vmem_to_hbm [thread:$0]  (%p1294_p12), %s1229_s24, 128, %s1227_s8, %s424_s26  }
 0x307 PF: > { %s450_s28 = sand.u32 1, %s952_s12   ;;  %p1295_p3 = scmp.ne.s32.totalorder %s1287_s23, 0 }
 0x308   : > { %p1296_p5 = scmp.ge.s32.totalorder %s972_s17, 2  ;;  %s451_s20 = scalar_lea.sflag [#allocation4], %s450_s28 }
 0x30a   : > { %p732_p9 = pnand %p1296_p5, %p1295_p3 }
 0x30c   : > { %947 = dma.done.wait (!%p732_p9), %s451_s20, 128  }
 0x30d   : > { %949 = vsyncadd (!%p732_p9), %s451_s20, 4294967168  ;;  %s20_s17 = sadd.s32 1, %s972_s17   ;;  %s1297_s12 = smov %s956_s13 }
 0x30e   : > { %p17_p11 = scmp.ge.s32.totalorder %s20_s17, 4   ;;  %s1298_s13 = smov %s960_s14 }
 0x30f   : > { %s1299_s14 = smov %s1145_s18  ;;  %s1300_s15 = smov %s968_s16 }
 0x310   : > { %s1301_s16 = smov %s1303_s19  ;;  %19 = sbr.rel (!%p17_p11) target bundleno = 7 (0x7), region = 86 }
 0x317   :  { %456 = vsyncpa [#allocation3], 1 }
 0x318   :  { %458 = vsyncpa [#allocation3 + $0x1], 1 }
 0x319   :  { %459 = vsyncpa [#allocation6], 1 }
 0x31a   :  { %460 = vsyncpa [#allocation4], 1 }
 0x31b   :  { %462 = vsyncpa [#allocation4 + $0x1], 1 }

</bundles_post_ra>
